<compile_context>
chip_gen: v5e
topology: v5e:2x2
jax: 0.10.0
libtpu: 0.0.40
codegen_flags: <defaults>
</compile_context>

<pallas_src>
import functools

import jax
import jax.numpy as jnp
from jax import lax
from jax.experimental import pallas as pl
from jax.experimental.pallas import tpu as pltpu

LANE = 128           # lane width; fc3 output padded to this for a lane-dense store
NEG_BIG = -1e30      # finite "minus infinity" for masking padded logit columns


def policy_forward_kernel(x_ref, w1_ref, b1_ref, w2_ref, b2_ref, w3_ref, b3_ref,
                          out_ref, *, n_actions):
    """fc1 -> ReLU -> fc2 -> ReLU -> fc3(padded to 128 lanes) -> masked softmax."""
    # bf16 operands into the MXU, f32 accumulation.
    x = x_ref[...].astype(jnp.bfloat16)

    # fc1 + ReLU
    h1 = jnp.dot(x, w1_ref[...], preferred_element_type=jnp.float32) + b1_ref[...]
    h1 = jnp.maximum(h1, 0.0).astype(jnp.bfloat16)

    # fc2 + ReLU
    h2 = jnp.dot(h1, w2_ref[...], preferred_element_type=jnp.float32) + b2_ref[...]
    h2 = jnp.maximum(h2, 0.0).astype(jnp.bfloat16)

    # fc3: zero-padded to a full 128-column slab -> full-width MXU pass and a
    # lane-dense output store.
    logits = jnp.dot(h2, w3_ref[...], preferred_element_type=jnp.float32) + b3_ref[...]

    # Mask padded action columns so they do not pollute the softmax max/sum.
    col = lax.broadcasted_iota(jnp.int32, logits.shape, 1)
    logits = jnp.where(col < n_actions, logits, NEG_BIG)

    # Numerically stable softmax over dim=1; divide goes to the EUP.
    m = jnp.max(logits, axis=1, keepdims=True)
    e = jnp.exp(logits - m)                      # padded cols -> exp(<= -1e30) == 0
    denom = jnp.sum(e, axis=1, keepdims=True)
    out_ref[...] = (e * pl.reciprocal(denom, approx=True)).astype(out_ref.dtype)


def policy_forward(state, kernel_params, *, n_actions, block_b=None):
    """Pallas wrapper. Returns (B, n_actions) action probabilities (f32)."""
    w1, b1, w2, b2, w3p, b3p = kernel_params
    B, in_dim = state.shape
    fc1 = w1.shape[1]
    fc2 = w2.shape[1]

    # Batch tile: whole batch at small B; for large rollout batches pass block_b
    # (a multiple of 8) to shard rows across TensorCores via the parallel axis.
    tb = B if block_b is None else min(block_b, B)
    grid = (pl.cdiv(B, tb),)

    const = lambda i: (0, 0)  # weights: same block every grid step (no re-DMA)

    flops = 2 * B * (in_dim * fc1 + fc1 * fc2 + fc2 * LANE)
    bytes_accessed = (
        state.size * state.dtype.itemsize
        + sum(p.size * p.dtype.itemsize for p in kernel_params)
        + B * LANE * 4
    )

    out = pl.pallas_call(
        functools.partial(policy_forward_kernel, n_actions=n_actions),
        out_shape=jax.ShapeDtypeStruct((B, LANE), jnp.float32),
        grid_spec=pltpu.PrefetchScalarGridSpec(
            num_scalar_prefetch=0,
            grid=grid,
            in_specs=[
                pl.BlockSpec((tb, in_dim), lambda i: (i, 0)),   # state tile
                pl.BlockSpec((in_dim, fc1), const),             # w1 (bf16)
                pl.BlockSpec((1, fc1), const),                  # b1 (f32)
                pl.BlockSpec((fc1, fc2), const),                # w2 (bf16)
                pl.BlockSpec((1, fc2), const),                  # b2 (f32)
                pl.BlockSpec((fc2, LANE), const),               # w3 padded (bf16)
                pl.BlockSpec((1, LANE), const),                 # b3 padded (f32)
            ],
            out_specs=pl.BlockSpec((tb, LANE), lambda i: (i, 0)),
        ),
        compiler_params=pltpu.CompilerParams(
            dimension_semantics=("parallel",),
        ),
        cost_estimate=pl.CostEstimate(
            flops=flops,
            transcendentals=B * (LANE + 1),
            bytes_accessed=bytes_accessed,
        ),
    )(state, w1, b1, w2, b2, w3p, b3p)

    # TODO(synk): for per-env-step rollouts, keep weights VMEM-resident across
    # calls (P10 cross-call prefetch) or batch timesteps into one call.
    # Drop the padded action columns (they are exactly 0 after the softmax mask).
    return out[:, :n_actions]


def init_params(key, input_dim, fc1_dims, fc2_dims, n_actions):
    """torch.nn.Linear-style U(-1/sqrt(fan_in), 1/sqrt(fan_in)) init.

    Returns (params_f32, params_kernel):
      params_f32    : exact f32 weights, weights as (in, out), biases (1, out)
      params_kernel : bf16 weights, f32 biases, fc3 zero-padded to LANE columns
    """
    def linear(k, fan_in, fan_out):
        kw, kb = jax.random.split(k)
        bound = 1.0 / jnp.sqrt(jnp.float32(fan_in))
        w = jax.random.uniform(kw, (fan_in, fan_out), jnp.float32, -bound, bound)
        b = jax.random.uniform(kb, (1, fan_out), jnp.float32, -bound, bound)
        return w, b

    k1, k2, k3 = jax.random.split(key, 3)
    w1, b1 = linear(k1, input_dim, fc1_dims)
    w2, b2 = linear(k2, fc1_dims, fc2_dims)
    w3, b3 = linear(k3, fc2_dims, n_actions)
    params_f32 = (w1, b1, w2, b2, w3, b3)

    w3p = jnp.zeros((fc2_dims, LANE), jnp.float32).at[:, :n_actions].set(w3)
    b3p = jnp.zeros((1, LANE), jnp.float32).at[:, :n_actions].set(b3)
    params_kernel = (
        w1.astype(jnp.bfloat16), b1,
        w2.astype(jnp.bfloat16), b2,
        w3p.astype(jnp.bfloat16), b3p,
    )
    return params_f32, params_kernel


def reference_forward(state, params_f32):
    """Pure-JAX reference mirroring the kernel's bf16-operand / f32-accum math."""
    w1, b1, w2, b2, w3, b3 = params_f32
    x = state.astype(jnp.bfloat16)
    h1 = jnp.dot(x, w1.astype(jnp.bfloat16),
                 preferred_element_type=jnp.float32) + b1
    h1 = jnp.maximum(h1, 0.0).astype(jnp.bfloat16)
    h2 = jnp.dot(h1, w2.astype(jnp.bfloat16),
                 preferred_element_type=jnp.float32) + b2
    h2 = jnp.maximum(h2, 0.0).astype(jnp.bfloat16)
    logits = jnp.dot(h2, w3.astype(jnp.bfloat16),
                     preferred_element_type=jnp.float32) + b3
    return jax.nn.softmax(logits, axis=1)


if __name__ == "__main__":
    # CartPole-like dims: input_dims=(4,), fc1=128, fc2=128, n_actions=2
    B, IN_DIM, FC1, FC2, N_ACT = 8, 4, 128, 128, 2

    key = jax.random.PRNGKey(0)
    k_params, k_state = jax.random.split(key)
    params_f32, params_kernel = init_params(k_params, IN_DIM, FC1, FC2, N_ACT)
    state = jax.random.normal(k_state, (B, IN_DIM), jnp.float32)

    probs = jax.block_until_ready(
        policy_forward(state, params_kernel, n_actions=N_ACT))
    ref = jax.block_until_ready(reference_forward(state, params_f32))

    assert probs.shape == (B, N_ACT)
    # probabilities sum to 1 (tolerance covers the approx EUP reciprocal)
    assert jnp.allclose(jnp.sum(probs, axis=1), 1.0, atol=5e-3)
    # match the bf16-path reference
    assert jnp.allclose(probs, ref, atol=2e-3, rtol=1e-2)

    print("KERNEL_OK")
</pallas_src>

<mosaic_0001>
module attributes {stable_mosaic.version = 11 : i64} {
  func.func @policy_forward_kernel(%arg0: i32, %arg1: memref<8x4xf32, #tpu.memory_space<vmem>>, %arg2: memref<4x128xbf16, #tpu.memory_space<vmem>>, %arg3: memref<1x128xf32, #tpu.memory_space<vmem>>, %arg4: memref<128x128xbf16, #tpu.memory_space<vmem>>, %arg5: memref<1x128xf32, #tpu.memory_space<vmem>>, %arg6: memref<128x128xbf16, #tpu.memory_space<vmem>>, %arg7: memref<1x128xf32, #tpu.memory_space<vmem>>, %arg8: memref<8x128xf32, #tpu.memory_space<vmem>>) attributes {dimension_semantics = [#tpu.dimension_semantics<parallel>], iteration_bounds = array<i64: 1>, scalar_prefetch = 0 : i64, scratch_operands = 0 : i64, tpu.core_type = #tpu.core_type<tc>, window_params = [{transform_indices = @transform_0, window_bounds = array<i64: 8, 4>}, {pipeline_mode = #tpu.pipeline_mode<synchronous>, transform_indices = @transform_1, window_bounds = array<i64: 4, 128>}, {pipeline_mode = #tpu.pipeline_mode<synchronous>, transform_indices = @transform_2, window_bounds = array<i64: 1, 128>}, {pipeline_mode = #tpu.pipeline_mode<synchronous>, transform_indices = @transform_3, window_bounds = array<i64: 128, 128>}, {pipeline_mode = #tpu.pipeline_mode<synchronous>, transform_indices = @transform_4, window_bounds = array<i64: 1, 128>}, {pipeline_mode = #tpu.pipeline_mode<synchronous>, transform_indices = @transform_5, window_bounds = array<i64: 128, 128>}, {pipeline_mode = #tpu.pipeline_mode<synchronous>, transform_indices = @transform_6, window_bounds = array<i64: 1, 128>}, {transform_indices = @transform_7, window_bounds = array<i64: 8, 128>}]} {
    %c0 = arith.constant 0 : index
    %c0_0 = arith.constant 0 : index
    %0 = vector.load %arg1[%c0, %c0_0] : memref<8x4xf32, #tpu.memory_space<vmem>>, vector<8x4xf32>
    %1 = arith.truncf %0 : vector<8x4xf32> to vector<8x4xbf16>
    %c0_1 = arith.constant 0 : index
    %c0_2 = arith.constant 0 : index
    %2 = vector.load %arg2[%c0_1, %c0_2] : memref<4x128xbf16, #tpu.memory_space<vmem>>, vector<4x128xbf16>
    %cst = arith.constant dense<0.000000e+00> : vector<8x128xf32>
    %3 = tpu.matmul %1, %2, %cst {dimension_numbers = #tpu.dot_dimension_numbers<[1], [0], [0], [1], [0, 0, 1, 1], [], []>} : vector<8x4xbf16>, vector<4x128xbf16>, vector<8x128xf32> -> vector<8x128xf32>
    %c0_3 = arith.constant 0 : index
    %c0_4 = arith.constant 0 : index
    %4 = vector.load %arg3[%c0_3, %c0_4] : memref<1x128xf32, #tpu.memory_space<vmem>>, vector<1x128xf32>
    %5 = vector.broadcast %4 : vector<1x128xf32> to vector<8x128xf32>
    %6 = arith.addf %3, %5 : vector<8x128xf32>
    %cst_5 = arith.constant 0.000000e+00 : f32
    %7 = vector.broadcast %cst_5 : f32 to vector<8x128xf32>
    %8 = arith.maximumf %6, %7 : vector<8x128xf32>
    %9 = arith.truncf %8 : vector<8x128xf32> to vector<8x128xbf16>
    %c0_6 = arith.constant 0 : index
    %c0_7 = arith.constant 0 : index
    %10 = vector.load %arg4[%c0_6, %c0_7] : memref<128x128xbf16, #tpu.memory_space<vmem>>, vector<128x128xbf16>
    %cst_8 = arith.constant dense<0.000000e+00> : vector<8x128xf32>
    %11 = tpu.matmul %9, %10, %cst_8 {dimension_numbers = #tpu.dot_dimension_numbers<[1], [0], [0], [1], [0, 0, 1, 1], [], []>} : vector<8x128xbf16>, vector<128x128xbf16>, vector<8x128xf32> -> vector<8x128xf32>
    %c0_9 = arith.constant 0 : index
    %c0_10 = arith.constant 0 : index
    %12 = vector.load %arg5[%c0_9, %c0_10] : memref<1x128xf32, #tpu.memory_space<vmem>>, vector<1x128xf32>
    %13 = vector.broadcast %12 : vector<1x128xf32> to vector<8x128xf32>
    %14 = arith.addf %11, %13 : vector<8x128xf32>
    %cst_11 = arith.constant 0.000000e+00 : f32
    %15 = vector.broadcast %cst_11 : f32 to vector<8x128xf32>
    %16 = arith.maximumf %14, %15 : vector<8x128xf32>
    %17 = arith.truncf %16 : vector<8x128xf32> to vector<8x128xbf16>
    %c0_12 = arith.constant 0 : index
    %c0_13 = arith.constant 0 : index
    %18 = vector.load %arg6[%c0_12, %c0_13] : memref<128x128xbf16, #tpu.memory_space<vmem>>, vector<128x128xbf16>
    %cst_14 = arith.constant dense<0.000000e+00> : vector<8x128xf32>
    %19 = tpu.matmul %17, %18, %cst_14 {dimension_numbers = #tpu.dot_dimension_numbers<[1], [0], [0], [1], [0, 0, 1, 1], [], []>} : vector<8x128xbf16>, vector<128x128xbf16>, vector<8x128xf32> -> vector<8x128xf32>
    %c0_15 = arith.constant 0 : index
    %c0_16 = arith.constant 0 : index
    %20 = vector.load %arg7[%c0_15, %c0_16] : memref<1x128xf32, #tpu.memory_space<vmem>>, vector<1x128xf32>
    %21 = vector.broadcast %20 : vector<1x128xf32> to vector<8x128xf32>
    %22 = arith.addf %19, %21 : vector<8x128xf32>
    %23 = tpu.iota {dimensions = array<i32: 1>} : vector<8x128xi32>
    %c2_i32 = arith.constant 2 : i32
    %24 = vector.broadcast %c2_i32 : i32 to vector<8x128xi32>
    %25 = arith.cmpi slt, %23, %24 : vector<8x128xi32>
    %cst_17 = arith.constant -1.000000e+30 : f32
    %26 = vector.broadcast %cst_17 : f32 to vector<8x128xf32>
    %27 = arith.select %25, %22, %26 : vector<8x128xi1>, vector<8x128xf32>
    %cst_18 = arith.constant dense<0xFF800000> : vector<8xf32>
    %28 = vector.multi_reduction <maximumf>, %27, %cst_18 [1] : vector<8x128xf32> to vector<8xf32>
    %29 = vector.shape_cast %28 : vector<8xf32> to vector<8x1xf32>
    %30 = vector.broadcast %29 : vector<8x1xf32> to vector<8x128xf32>
    %31 = arith.subf %27, %30 : vector<8x128xf32>
    %32 = math.exp %31 : vector<8x128xf32>
    %cst_19 = arith.constant dense<0.000000e+00> : vector<8xf32>
    %33 = vector.multi_reduction <add>, %32, %cst_19 [1] : vector<8x128xf32> to vector<8xf32>
    %34 = vector.shape_cast %33 : vector<8xf32> to vector<8x1xf32>
    %35 = tpu.reciprocal %34 {approx = true} : vector<8x1xf32> -> vector<8x1xf32>
    %36 = vector.broadcast %35 : vector<8x1xf32> to vector<8x128xf32>
    %37 = arith.mulf %32, %36 : vector<8x128xf32>
    %c0_20 = arith.constant 0 : index
    %c0_21 = arith.constant 0 : index
    %38 = vector.load %arg8[%c0_20, %c0_21] : memref<8x128xf32, #tpu.memory_space<vmem>>, vector<8x128xf32>
    tpu.vector_store %arg8[%c0_20, %c0_21], %37 {strides = array<i32>} : memref<8x128xf32, #tpu.memory_space<vmem>>, vector<8x128xf32>,
    return
  }
  func.func @transform_0(%arg0: i32) -> (i32, i32) {
    %c0_i32 = arith.constant 0 : i32
    %c0_i32_0 = arith.constant 0 : i32
    return %arg0, %c0_i32 : i32, i32
  }
  func.func @transform_1(%arg0: i32) -> (i32, i32) {
    %c0_i32 = arith.constant 0 : i32
    %c0_i32_0 = arith.constant 0 : i32
    %c0_i32_1 = arith.constant 0 : i32
    return %c0_i32, %c0_i32_0 : i32, i32
  }
  func.func @transform_2(%arg0: i32) -> (i32, i32) {
    %c0_i32 = arith.constant 0 : i32
    %c0_i32_0 = arith.constant 0 : i32
    %c0_i32_1 = arith.constant 0 : i32
    return %c0_i32, %c0_i32_0 : i32, i32
  }
  func.func @transform_3(%arg0: i32) -> (i32, i32) {
    %c0_i32 = arith.constant 0 : i32
    %c0_i32_0 = arith.constant 0 : i32
    %c0_i32_1 = arith.constant 0 : i32
    return %c0_i32, %c0_i32_0 : i32, i32
  }
  func.func @transform_4(%arg0: i32) -> (i32, i32) {
    %c0_i32 = arith.constant 0 : i32
    %c0_i32_0 = arith.constant 0 : i32
    %c0_i32_1 = arith.constant 0 : i32
    return %c0_i32, %c0_i32_0 : i32, i32
  }
  func.func @transform_5(%arg0: i32) -> (i32, i32) {
    %c0_i32 = arith.constant 0 : i32
    %c0_i32_0 = arith.constant 0 : i32
    %c0_i32_1 = arith.constant 0 : i32
    return %c0_i32, %c0_i32_0 : i32, i32
  }
  func.func @transform_6(%arg0: i32) -> (i32, i32) {
    %c0_i32 = arith.constant 0 : i32
    %c0_i32_0 = arith.constant 0 : i32
    %c0_i32_1 = arith.constant 0 : i32
    return %c0_i32, %c0_i32_0 : i32, i32
  }
  func.func @transform_7(%arg0: i32) -> (i32, i32) {
    %c0_i32 = arith.constant 0 : i32
    %c0_i32_0 = arith.constant 0 : i32
    return %arg0, %c0_i32 : i32, i32
  }
}

</mosaic_0001>

<bundles_post_ra>
// kernel: tpu_custom_call.1
= control target key start
LH: loop header
LB: loop body
LE: loop exit
PB: predicated region body
PF: predicated region fallthrough
CT: control target
= control target key end

     0   :  { %12 = vsyncpa [#allocation3], 0  ;;  %s526_s0 = inlined_call_operand.vmem [shape: f32[8,4], index: 0, kind: input, shape index: {}]   ;;  %s527_s1 = inlined_call_operand.vmem [shape: bf16[4,128], index: 1, kind: input, shape index: {}]   ;;  %s528_s2 = inlined_call_operand.vmem [shape: f32[1,128], index: 2, kind: input, shape index: {}]   ;;  %s529_s3 = inlined_call_operand.hbm [shape: bf16[128,128], index: 3, kind: input, shape index: {}]   ;;  %s530_s4 = inlined_call_operand.vmem [shape: f32[1,128], index: 4, kind: input, shape index: {}]   ;;  %s531_s5 = inlined_call_operand.hbm [shape: bf16[128,128], index: 5, kind: input, shape index: {}]   ;;  %s532_s6 = inlined_call_operand.vmem [shape: f32[1,128], index: 6, kind: input, shape index: {}]   ;;  %s533_s7 = inlined_call_operand.hbm [shape: f32[8,128], index: 7, kind: output, shape index: {}]  }
   0x1   :  { %13 = vsyncpa [#allocation6], 0 }
   0x2   :  { %14 = vsyncpa [#allocation4], 0  ;;  %s25_s26 = sshll.u32 %s529_s3, 4  ;;  %s457_s27 = smov [#allocation2]   ;;  %s26_s26 = int_to_ptr.hbm [resolvable:$true] %s25_s26 }
   0x3   :  { %s27_s28 = sshll.u32 %s457_s27, 4  ;;  %s40_s8 = sshll.u32 %s531_s5, 4  ;;  %s28_s28 = int_to_ptr.vmem [resolvable:$true] %s27_s28  ;;  %s41_s8 = int_to_ptr.hbm [resolvable:$true] %s40_s8 }
   0x4   :  { %s458_s9 = smov 64   ;;  %s459_s10 = smov 4  }
   0x5   :  { %33 = dma.hbm_to_vmem [thread:$0]  %s26_s26, 1024, %s28_s28, [#allocation3], %s458_s9, %s458_s9, %s459_s10  }
   0x6   :  { %s460_s11 = smov [#allocation5]  }
   0x7   :  { %s42_s12 = sshll.u32 %s460_s11, 4  ;;  %s43_s12 = int_to_ptr.vmem [resolvable:$true] %s42_s12 }
   0x8   :  { %48 = dma.hbm_to_vmem [thread:$0]  %s41_s8, 1024, %s43_s12, [#allocation6], %s458_s9, %s458_s9, %s459_s10  }
   0x9   :  { %451 = dma.done.wait [#allocation3], 1024  }
   0xa   :  { %452 = vsyncadd [#allocation3], 4294966272 }
   0xb   :  { %453 = dma.done.wait [#allocation6], 1024  }
   0xc   :  { %454 = vsyncadd [#allocation6], 4294966272  ;;  %vm71_vm0 = vcmask 1041408   ;;  %v62_v0 = vld [vmem:[%s527_s1] sm:$0x3]  ;;  %v358_v2 = vld [vmem:[#allocation2 + $0x38] sm:$0xff]  ;;  %v254_v32 = vlaneseq }
   0xd   :  { %v60_v1 = vld [vmem:[%s526_s0] sm:$0xff]  ;;  %v73_v3 = vsel %vm71_vm0, %v62_v0, 0  ;;  %vm67_vm1 = vcmask 31744   ;;  %158 = vmatpush.bf16.msra.mxu1 %v358_v2  ;;  %v357_v5 = vld [vmem:[#allocation2 + $0x30] sm:$0xff]  ;;  %v356_v6 = vld [vmem:[#allocation2 + $0x28] sm:$0xff] }
   0xe   :  { %v61_v4 = vpack.c.bf16 %v60_v1, %v60_v1  ;;  %82 = vmatpush.bf16.msra.mxu0 %v73_v3  ;;  %v355_v7 = vld [vmem:[#allocation2 + $0x20] sm:$0xff]  ;;  %v354_v8 = vld [vmem:[#allocation2 + $0x18] sm:$0xff]  ;;  %v353_v9 = vld [vmem:[#allocation2 + $0x10] sm:$0xff]  ;;  %v255_v33 = vand.u32 127, %v254_v32 }
   0xf   :  { %v352_v10 = vld [vmem:[#allocation2 + $0x8] sm:$0xff]  ;;  %v351_v11 = vld [vmem:[#allocation2] sm:$0xff]  ;;  %v366_v12 = vld [vmem:[#allocation5 + $0x38] sm:$0xff] }
  0x10   :  { %241 = vmatpush.bf16.msra.mxu2 %v366_v12  ;;  %v365_v13 = vld [vmem:[#allocation5 + $0x30] sm:$0xff]  ;;  %v364_v14 = vld [vmem:[#allocation5 + $0x28] sm:$0xff]  ;;  %v363_v15 = vld [vmem:[#allocation5 + $0x20] sm:$0xff]  ;;  %vm256_vm2 = vcmp.lt.s32.totalorder %v255_v33, 2 }
  0x11   :  { %286 = vmatmul.msk.bf16.vlgmr.msra.gmra.mxu0 %vm67_vm1, %v61_v4  ;;  %159 = vmatpush.bf16.msra.mxu1 %v357_v5  ;;  %v362_v16 = vld [vmem:[#allocation5 + $0x18] sm:$0xff]  ;;  %v361_v17 = vld [vmem:[#allocation5 + $0x10] sm:$0xff]  ;;  %v372_v18 = vld [vmem:[%s528_s2] ss:$0 sm:$0xff] }
  0x12   :  { %v360_v24 = vld [vmem:[#allocation5 + $0x8] sm:$0xff]  ;;  %v359_v25 = vld [vmem:[#allocation5] sm:$0xff] }
  0x13   :  { %v373_v26 = vld [vmem:[%s530_s4] ss:$0 sm:$0xff]  ;;  %s461_s4 = smov [#allocation7]  }
  0x14   :  { %242 = vmatpush.bf16.msra.mxu2 %v365_v13  ;;  %v374_v34 = vld [vmem:[%s532_s6] ss:$0 sm:$0xff]  ;;  %s273_s18 = sshll.u32 %s461_s4, 4  ;;  %s275_s6 = sshll.u32 %s533_s7, 4  ;;  %s274_s18 = int_to_ptr.vmem [resolvable:$true] %s273_s18  ;;  %s276_s6 = int_to_ptr.hbm [resolvable:$true] %s275_s6 }
  0x15   :  { %160 = vmatpush.bf16.msra.mxu1 %v356_v6 }
  0x18   :  { %243 = vmatpush.bf16.msra.mxu2 %v364_v14 }
  0x19   :  { %161 = vmatpush.bf16.msra.mxu1 %v355_v7 }
  0x1c   :  { %244 = vmatpush.bf16.msra.mxu2 %v363_v15 }
  0x1d   :  { %162 = vmatpush.bf16.msra.mxu1 %v354_v8 }
  0x20   :  { %245 = vmatpush.bf16.msra.mxu2 %v362_v16 }
  0x21   :  { %163 = vmatpush.bf16.msra.mxu1 %v353_v9 }
  0x24   :  { %246 = vmatpush.bf16.msra.mxu2 %v361_v17 }
  0x25   :  { %164 = vmatpush.bf16.msra.mxu1 %v352_v10 }
  0x28   :  { %247 = vmatpush.bf16.msra.mxu2 %v360_v24 }
  0x29   :  { %165 = vmatpush.bf16.msra.mxu1 %v351_v11 }
  0x2c   :  { %248 = vmatpush.bf16.msra.mxu2 %v359_v25 }
  0x8e   :  { %v84_v19 = vpop.f32.mrf.mxu0 }
  0x8f   :  { %v85_v20 = vadd.f32 %v372_v18, %v84_v19 }
  0x91   :  { %v88_v21 = vmax.f32 %v85_v20, 0.0 }
  0x93   :  { %v89_v22 = vpack.c.bf16 %v88_v21, %v88_v21 }
  0x95   :  { %166 = vmatmul.bf16.vlgmr.msra.gmra.mxu1 %v89_v22 }
  0x96   :  { %v86_v23 = vpop.f32.mrf.mxu0 }
 0x112   :  { %v167_v27 = vpop.f32.mrf.mxu1 }
 0x113   :  { %v168_v28 = vadd.f32 %v373_v26, %v167_v27 }
 0x115   :  { %v171_v29 = vmax.f32 %v168_v28, 0.0 }
 0x117   :  { %v172_v30 = vpack.c.bf16 %v171_v29, %v171_v29 }
 0x119   :  { %249 = vmatmul.bf16.vlgmr.msra.gmra.mxu2 %v172_v30 }
 0x11a   :  { %v169_v31 = vpop.f32.mrf.mxu1 }
 0x19c   :  { %v250_v35 = vpop.f32.mrf.mxu2 }
 0x19d   :  { %v251_v36 = vadd.f32 %v374_v34, %v250_v35 }
 0x19f   :  { %v257_v37 = vsel %vm256_vm2, %v251_v36, -1e+30 }
 0x1a0   :  { %258 = vmax.xlane.f32.xlu0 %v257_v37 }
 0x1a4   :  { %v252_v38 = vpop.f32.mrf.mxu2 }
 0x213   :  { %v259_v39 = vpop.xlane.xlu0 %258 }
 0x214   :  { %v260_v40 = vsub.f32 %v257_v37, %v259_v39 }
 0x216   :  { %v261_v41 = vmul.f32 1.442695, %v260_v40 }
 0x218   :  { %375 = vpow2.f32 %v261_v41 }
 0x21e   :  { %v376_v42 = vpop.eup %375 }
 0x21f   :  { %263 = vadd.xlane.f32.xlu0 %v376_v42 }
 0x292   :  { %v264_v43 = vpop.xlane.xlu0 %263 }
 0x293   :  { %377 = vrcp.f32 %v264_v43 }
 0x299   :  { %v378_v44 = vpop.eup %377 }
 0x29a   :  { %v266_v45 = vmul.f32 %v378_v44, %v376_v42 }
 0x29c   :  { %267 = vst [vmem:[#allocation7] sm:$0xff] %v266_v45 }
 0x29d   :  { %278 = dma.vmem_to_hbm [thread:$0]  %s274_s18, 128, %s276_s6, [#allocation4]  }
 0x29e   :  { %455 = dma.done.wait [#allocation4], 128  }
 0x29f   :  { %456 = vsyncadd [#allocation4], 4294967168 }
 0x2a0   :  { %283 = vsyncpa [#allocation3], 1 }
 0x2a1   :  { %284 = vsyncpa [#allocation6], 1 }
 0x2a2   :  { %285 = vsyncpa [#allocation4], 1 }

</bundles_post_ra>
